<compile_context>
chip_gen: v5e
topology: v5e:2x2
jax: 0.10.0
libtpu: 0.0.40
codegen_flags: <defaults>
</compile_context>

<pallas_src>
import jax
import jax.numpy as jnp
from jax.experimental import pallas as pl
from jax.experimental.pallas import tpu as pltpu


def _frelu_kernel(w_ref, b_ref, x_ref, o_ref):
    # w_ref: (C*9,) f32 SMEM  -- folded (BN scale * conv weight), row-major [kh, kw]
    # b_ref: (C,)   f32 SMEM  -- folded BN bias
    # x_ref: (H, W)           -- one (batch, channel) image plane
    # o_ref: (H, W)
    H, W = x_ref.shape
    c = pl.program_id(1)

    x = x_ref[...].astype(jnp.float32)

    # Hoisted scalar reads and boundary masks (computed once, reused).
    taps = [w_ref[c * 9 + k] for k in range(9)]
    bias = b_ref[c]
    row = jax.lax.broadcasted_iota(jnp.int32, (H, W), 0)
    col = jax.lax.broadcasted_iota(jnp.int32, (H, W), 1)
    top, bot = row == 0, row == H - 1
    left, right = col == 0, col == W - 1

    # Row-shifted planes via circular roll on the sublane axis + zeroed wrap:
    #   rows[kh][i, j] == x[i + kh - 1, j]   (0 outside the image)
    x_dn = jnp.where(top, 0.0, pltpu.roll(x, 1, 0))        # x[i-1, j]
    x_up = jnp.where(bot, 0.0, pltpu.roll(x, H - 1, 0))    # x[i+1, j]
    rows = (x_dn, x, x_up)

    acc = jnp.zeros((H, W), jnp.float32)
    for kh in range(3):
        xr = rows[kh]
        # Column shifts via lane roll: cols[kw][i, j] == xr[i, j + kw - 1]
        xr_l = jnp.where(left, 0.0, pltpu.roll(xr, 1, 1))       # xr[i, j-1]
        xr_r = jnp.where(right, 0.0, pltpu.roll(xr, W - 1, 1))  # xr[i, j+1]
        cols = (xr_l, xr, xr_r)
        for kw in range(3):
            acc = acc + cols[kw] * taps[kh * 3 + kw]

    y = acc + bias                      # BN scale already folded into taps
    o_ref[...] = jnp.maximum(x, y).astype(o_ref.dtype)


@jax.jit
def frelu_pallas(x, w, scale, bias):
    """x: (B, C, H, W); w: (C, 3, 3) depthwise weights; scale/bias: (C,) folded BN."""
    B, C, H, W = x.shape
    w_fused = (w.astype(jnp.float32)
               * scale.astype(jnp.float32)[:, None, None]).reshape(C * 9)
    bias_f = bias.astype(jnp.float32)

    elems = B * C * H * W
    cost = pl.CostEstimate(
        flops=19 * elems,                                   # 9 mul + 8 add + bias + max
        transcendentals=0,
        bytes_accessed=2 * elems * x.dtype.itemsize + (C * 9 + C) * 4,
    )

    return pl.pallas_call(
        _frelu_kernel,
        out_shape=jax.ShapeDtypeStruct((B, C, H, W), x.dtype),
        grid_spec=pltpu.PrefetchScalarGridSpec(
            num_scalar_prefetch=0,
            grid=(B, C),
            in_specs=[
                pl.BlockSpec(memory_space=pltpu.MemorySpace.SMEM),   # fused taps
                pl.BlockSpec(memory_space=pltpu.MemorySpace.SMEM),   # bias
                pl.BlockSpec((None, None, H, W), lambda b, c: (b, c, 0, 0)),
            ],
            out_specs=pl.BlockSpec((None, None, H, W), lambda b, c: (b, c, 0, 0)),
        ),
        compiler_params=pltpu.CompilerParams(
            dimension_semantics=("parallel", "parallel")),
        cost_estimate=cost,
    )(w_fused, bias_f, x)


def frelu_reference(x, w, scale, bias):
    """Pure-JAX reference (lax depthwise conv, NCHW) for correctness checking."""
    C = x.shape[1]
    w_oihw = w[:, None, :, :]                                 # (C, 1, 3, 3)
    y = jax.lax.conv_general_dilated(
        x, w_oihw, window_strides=(1, 1), padding="SAME",
        dimension_numbers=("NCHW", "OIHW", "NCHW"),
        feature_group_count=C)
    y = y * scale[None, :, None, None] + bias[None, :, None, None]
    return jnp.maximum(x, y)


if __name__ == "__main__":
    B, C, H, W = 2, 4, 16, 16

    key = jax.random.PRNGKey(0)
    kx, kw = jax.random.split(key)

    x = jax.random.normal(kx, (B, C, H, W), dtype=jnp.float32)

    # Depthwise conv weight: PyTorch shape (C, 1, 3, 3) -> stored here as (C, 3, 3).
    w_torch = jax.random.normal(kw, (C, 1, 3, 3), dtype=jnp.float32) * 0.1
    w = w_torch[:, 0, :, :]

    # Deterministic BatchNorm parameters (inference mode), folded to scale/bias.
    eps = 1e-5
    gamma = 1.0 + 0.1 * jnp.arange(C, dtype=jnp.float32)
    beta = 0.05 * jnp.arange(C, dtype=jnp.float32)
    running_mean = 0.01 * jnp.arange(C, dtype=jnp.float32)
    running_var = 1.0 + 0.02 * jnp.arange(C, dtype=jnp.float32)
    scale = gamma / jnp.sqrt(running_var + eps)
    bias = beta - running_mean * scale

    out = jax.block_until_ready(frelu_pallas(x, w, scale, bias))
    ref = frelu_reference(x, w, scale, bias)

    assert out.shape == (B, C, H, W)
    assert jnp.allclose(out, ref, atol=1e-5, rtol=1e-5), "mismatch vs reference"

    print("KERNEL_OK")
</pallas_src>

<mosaic_0001>
module attributes {stable_mosaic.version = 11 : i64} {
  func.func @_frelu_kernel(%arg0: i32, %arg1: i32, %arg2: memref<36xf32, #tpu.memory_space<smem>>, %arg3: memref<4xf32, #tpu.memory_space<smem>>, %arg4: memref<1x1x16x16xf32, #tpu.memory_space<vmem>>, %arg5: memref<1x1x16x16xf32, #tpu.memory_space<vmem>>) attributes {dimension_semantics = [#tpu.dimension_semantics<parallel>, #tpu.dimension_semantics<parallel>], iteration_bounds = array<i64: 2, 4>, scalar_prefetch = 0 : i64, scratch_operands = 0 : i64, tpu.core_type = #tpu.core_type<tc>, window_params = [{transform_indices = @transform_0, window_bounds = array<i64: 36>}, {transform_indices = @transform_1, window_bounds = array<i64: 4>}, {transform_indices = @transform_2, window_bounds = array<i64: 1, 1, 16, 16>}, {transform_indices = @transform_3, window_bounds = array<i64: 1, 1, 16, 16>}]} {
    %c0 = arith.constant 0 : index
    %c0_0 = arith.constant 0 : index
    %c0_1 = arith.constant 0 : index
    %c0_2 = arith.constant 0 : index
    %0 = vector.load %arg4[%c0, %c0_0, %c0_1, %c0_2] : memref<1x1x16x16xf32, #tpu.memory_space<vmem>>, vector<1x1x16x16xf32>
    %1 = vector.shape_cast %0 : vector<1x1x16x16xf32> to vector<16x16xf32>
    %c9_i32 = arith.constant 9 : i32
    %2 = arith.muli %arg1, %c9_i32 : i32
    %c0_i32 = arith.constant 0 : i32
    %3 = arith.addi %2, %c0_i32 : i32
    %4 = arith.index_cast %3 : i32 to index
    %5 = memref.load %arg2[%4] : memref<36xf32, #tpu.memory_space<smem>>
    %c9_i32_3 = arith.constant 9 : i32
    %6 = arith.muli %arg1, %c9_i32_3 : i32
    %c1_i32 = arith.constant 1 : i32
    %7 = arith.addi %6, %c1_i32 : i32
    %8 = arith.index_cast %7 : i32 to index
    %9 = memref.load %arg2[%8] : memref<36xf32, #tpu.memory_space<smem>>
    %c9_i32_4 = arith.constant 9 : i32
    %10 = arith.muli %arg1, %c9_i32_4 : i32
    %c2_i32 = arith.constant 2 : i32
    %11 = arith.addi %10, %c2_i32 : i32
    %12 = arith.index_cast %11 : i32 to index
    %13 = memref.load %arg2[%12] : memref<36xf32, #tpu.memory_space<smem>>
    %c9_i32_5 = arith.constant 9 : i32
    %14 = arith.muli %arg1, %c9_i32_5 : i32
    %c3_i32 = arith.constant 3 : i32
    %15 = arith.addi %14, %c3_i32 : i32
    %16 = arith.index_cast %15 : i32 to index
    %17 = memref.load %arg2[%16] : memref<36xf32, #tpu.memory_space<smem>>
    %c9_i32_6 = arith.constant 9 : i32
    %18 = arith.muli %arg1, %c9_i32_6 : i32
    %c4_i32 = arith.constant 4 : i32
    %19 = arith.addi %18, %c4_i32 : i32
    %20 = arith.index_cast %19 : i32 to index
    %21 = memref.load %arg2[%20] : memref<36xf32, #tpu.memory_space<smem>>
    %c9_i32_7 = arith.constant 9 : i32
    %22 = arith.muli %arg1, %c9_i32_7 : i32
    %c5_i32 = arith.constant 5 : i32
    %23 = arith.addi %22, %c5_i32 : i32
    %24 = arith.index_cast %23 : i32 to index
    %25 = memref.load %arg2[%24] : memref<36xf32, #tpu.memory_space<smem>>
    %c9_i32_8 = arith.constant 9 : i32
    %26 = arith.muli %arg1, %c9_i32_8 : i32
    %c6_i32 = arith.constant 6 : i32
    %27 = arith.addi %26, %c6_i32 : i32
    %28 = arith.index_cast %27 : i32 to index
    %29 = memref.load %arg2[%28] : memref<36xf32, #tpu.memory_space<smem>>
    %c9_i32_9 = arith.constant 9 : i32
    %30 = arith.muli %arg1, %c9_i32_9 : i32
    %c7_i32 = arith.constant 7 : i32
    %31 = arith.addi %30, %c7_i32 : i32
    %32 = arith.index_cast %31 : i32 to index
    %33 = memref.load %arg2[%32] : memref<36xf32, #tpu.memory_space<smem>>
    %c9_i32_10 = arith.constant 9 : i32
    %34 = arith.muli %arg1, %c9_i32_10 : i32
    %c8_i32 = arith.constant 8 : i32
    %35 = arith.addi %34, %c8_i32 : i32
    %36 = arith.index_cast %35 : i32 to index
    %37 = memref.load %arg2[%36] : memref<36xf32, #tpu.memory_space<smem>>
    %38 = arith.index_cast %arg1 : i32 to index
    %39 = memref.load %arg3[%38] : memref<4xf32, #tpu.memory_space<smem>>
    %40 = tpu.iota {dimensions = array<i32: 0>} : vector<16x16xi32>
    %41 = tpu.iota {dimensions = array<i32: 1>} : vector<16x16xi32>
    %c0_i32_11 = arith.constant 0 : i32
    %42 = vector.broadcast %c0_i32_11 : i32 to vector<16x16xi32>
    %43 = arith.cmpi eq, %40, %42 : vector<16x16xi32>
    %c15_i32 = arith.constant 15 : i32
    %44 = vector.broadcast %c15_i32 : i32 to vector<16x16xi32>
    %45 = arith.cmpi eq, %40, %44 : vector<16x16xi32>
    %c0_i32_12 = arith.constant 0 : i32
    %46 = vector.broadcast %c0_i32_12 : i32 to vector<16x16xi32>
    %47 = arith.cmpi eq, %41, %46 : vector<16x16xi32>
    %c15_i32_13 = arith.constant 15 : i32
    %48 = vector.broadcast %c15_i32_13 : i32 to vector<16x16xi32>
    %49 = arith.cmpi eq, %41, %48 : vector<16x16xi32>
    %c1_i32_14 = arith.constant 1 : i32
    %50 = tpu.dynamic_rotate %1 by %c1_i32_14 dim 0 : vector<16x16xf32>, i32 -> vector<16x16xf32>
    %cst = arith.constant 0.000000e+00 : f32
    %51 = vector.broadcast %cst : f32 to vector<16x16xf32>
    %52 = arith.select %43, %51, %50 : vector<16x16xi1>, vector<16x16xf32>
    %c15_i32_15 = arith.constant 15 : i32
    %53 = tpu.dynamic_rotate %1 by %c15_i32_15 dim 0 : vector<16x16xf32>, i32 -> vector<16x16xf32>
    %cst_16 = arith.constant 0.000000e+00 : f32
    %54 = vector.broadcast %cst_16 : f32 to vector<16x16xf32>
    %55 = arith.select %45, %54, %53 : vector<16x16xi1>, vector<16x16xf32>
    %cst_17 = arith.constant 0.000000e+00 : f32
    %56 = vector.broadcast %cst_17 : f32 to vector<16x16xf32>
    %c1_i32_18 = arith.constant 1 : i32
    %57 = tpu.dynamic_rotate %52 by %c1_i32_18 dim 1 : vector<16x16xf32>, i32 -> vector<16x16xf32>
    %cst_19 = arith.constant 0.000000e+00 : f32
    %58 = vector.broadcast %cst_19 : f32 to vector<16x16xf32>
    %59 = arith.select %47, %58, %57 : vector<16x16xi1>, vector<16x16xf32>
    %c15_i32_20 = arith.constant 15 : i32
    %60 = tpu.dynamic_rotate %52 by %c15_i32_20 dim 1 : vector<16x16xf32>, i32 -> vector<16x16xf32>
    %cst_21 = arith.constant 0.000000e+00 : f32
    %61 = vector.broadcast %cst_21 : f32 to vector<16x16xf32>
    %62 = arith.select %49, %61, %60 : vector<16x16xi1>, vector<16x16xf32>
    %63 = vector.broadcast %5 : f32 to vector<16x16xf32>
    %64 = arith.mulf %59, %63 : vector<16x16xf32>
    %65 = arith.addf %56, %64 : vector<16x16xf32>
    %66 = vector.broadcast %9 : f32 to vector<16x16xf32>
    %67 = arith.mulf %52, %66 : vector<16x16xf32>
    %68 = arith.addf %65, %67 : vector<16x16xf32>
    %69 = vector.broadcast %13 : f32 to vector<16x16xf32>
    %70 = arith.mulf %62, %69 : vector<16x16xf32>
    %71 = arith.addf %68, %70 : vector<16x16xf32>
    %c1_i32_22 = arith.constant 1 : i32
    %72 = tpu.dynamic_rotate %1 by %c1_i32_22 dim 1 : vector<16x16xf32>, i32 -> vector<16x16xf32>
    %cst_23 = arith.constant 0.000000e+00 : f32
    %73 = vector.broadcast %cst_23 : f32 to vector<16x16xf32>
    %74 = arith.select %47, %73, %72 : vector<16x16xi1>, vector<16x16xf32>
    %c15_i32_24 = arith.constant 15 : i32
    %75 = tpu.dynamic_rotate %1 by %c15_i32_24 dim 1 : vector<16x16xf32>, i32 -> vector<16x16xf32>
    %cst_25 = arith.constant 0.000000e+00 : f32
    %76 = vector.broadcast %cst_25 : f32 to vector<16x16xf32>
    %77 = arith.select %49, %76, %75 : vector<16x16xi1>, vector<16x16xf32>
    %78 = vector.broadcast %17 : f32 to vector<16x16xf32>
    %79 = arith.mulf %74, %78 : vector<16x16xf32>
    %80 = arith.addf %71, %79 : vector<16x16xf32>
    %81 = vector.broadcast %21 : f32 to vector<16x16xf32>
    %82 = arith.mulf %1, %81 : vector<16x16xf32>
    %83 = arith.addf %80, %82 : vector<16x16xf32>
    %84 = vector.broadcast %25 : f32 to vector<16x16xf32>
    %85 = arith.mulf %77, %84 : vector<16x16xf32>
    %86 = arith.addf %83, %85 : vector<16x16xf32>
    %c1_i32_26 = arith.constant 1 : i32
    %87 = tpu.dynamic_rotate %55 by %c1_i32_26 dim 1 : vector<16x16xf32>, i32 -> vector<16x16xf32>
    %cst_27 = arith.constant 0.000000e+00 : f32
    %88 = vector.broadcast %cst_27 : f32 to vector<16x16xf32>
    %89 = arith.select %47, %88, %87 : vector<16x16xi1>, vector<16x16xf32>
    %c15_i32_28 = arith.constant 15 : i32
    %90 = tpu.dynamic_rotate %55 by %c15_i32_28 dim 1 : vector<16x16xf32>, i32 -> vector<16x16xf32>
    %cst_29 = arith.constant 0.000000e+00 : f32
    %91 = vector.broadcast %cst_29 : f32 to vector<16x16xf32>
    %92 = arith.select %49, %91, %90 : vector<16x16xi1>, vector<16x16xf32>
    %93 = vector.broadcast %29 : f32 to vector<16x16xf32>
    %94 = arith.mulf %89, %93 : vector<16x16xf32>
    %95 = arith.addf %86, %94 : vector<16x16xf32>
    %96 = vector.broadcast %33 : f32 to vector<16x16xf32>
    %97 = arith.mulf %55, %96 : vector<16x16xf32>
    %98 = arith.addf %95, %97 : vector<16x16xf32>
    %99 = vector.broadcast %37 : f32 to vector<16x16xf32>
    %100 = arith.mulf %92, %99 : vector<16x16xf32>
    %101 = arith.addf %98, %100 : vector<16x16xf32>
    %102 = vector.broadcast %39 : f32 to vector<16x16xf32>
    %103 = arith.addf %101, %102 : vector<16x16xf32>
    %104 = arith.maximumf %1, %103 : vector<16x16xf32>
    %c0_30 = arith.constant 0 : index
    %c0_31 = arith.constant 0 : index
    %c0_32 = arith.constant 0 : index
    %c0_33 = arith.constant 0 : index
    %105 = vector.load %arg5[%c0_30, %c0_31, %c0_32, %c0_33] : memref<1x1x16x16xf32, #tpu.memory_space<vmem>>, vector<1x1x16x16xf32>
    %106 = vector.shape_cast %105 : vector<1x1x16x16xf32> to vector<16x16xf32>
    %107 = vector.shape_cast %104 : vector<16x16xf32> to vector<1x1x16x16xf32>
    tpu.vector_store %arg5[%c0_30, %c0_31, %c0_32, %c0_33], %107 {strides = array<i32>} : memref<1x1x16x16xf32, #tpu.memory_space<vmem>>, vector<1x1x16x16xf32>,
    return
  }
  func.func @transform_0(%arg0: i32, %arg1: i32) -> i32 {
    %c0_i32 = arith.constant 0 : i32
    %c0_i32_0 = arith.constant 0 : i32
    return %c0_i32 : i32
  }
  func.func @transform_1(%arg0: i32, %arg1: i32) -> i32 {
    %c0_i32 = arith.constant 0 : i32
    %c0_i32_0 = arith.constant 0 : i32
    return %c0_i32 : i32
  }
  func.func @transform_2(%arg0: i32, %arg1: i32) -> (i32, i32, i32, i32) {
    %c0_i32 = arith.constant 0 : i32
    %c0_i32_0 = arith.constant 0 : i32
    %c0_i32_1 = arith.constant 0 : i32
    return %arg0, %arg1, %c0_i32, %c0_i32_0 : i32, i32, i32, i32
  }
  func.func @transform_3(%arg0: i32, %arg1: i32) -> (i32, i32, i32, i32) {
    %c0_i32 = arith.constant 0 : i32
    %c0_i32_0 = arith.constant 0 : i32
    %c0_i32_1 = arith.constant 0 : i32
    return %arg0, %arg1, %c0_i32, %c0_i32_0 : i32, i32, i32, i32
  }
}

</mosaic_0001>

<bundles_post_ra>
// kernel: frelu_pallas.1
= control target key start
LH: loop header
LB: loop body
LE: loop exit
PB: predicated region body
PF: predicated region fallthrough
CT: control target
= control target key end

     0   :  { %s1200_s0 = inlined_call_operand.vmem [shape: f32[36], index: 0, kind: input, shape index: {}]   ;;  %s1201_s1 = inlined_call_operand.vmem [shape: f32[4], index: 1, kind: input, shape index: {}]   ;;  %s1202_s2 = inlined_call_operand.hbm [shape: f32[2,4,16,16], index: 2, kind: input, shape index: {}]   ;;  %s1203_s3 = inlined_call_operand.hbm [shape: f32[2,4,16,16], index: 3, kind: output, shape index: {}]  }
   0x1   :  { %1210 = sst [smem:[#allocation19_spill]] %s1200_s0 }
   0x2   :  { %1211 = sst [smem:[#allocation20_spill]] %s1201_s1 }
   0x3   :  { %8 = vsyncpa [#allocation5], 0 }
   0x4   :  { %9 = vsyncpa [#allocation7], 0 }
   0x5   :  { %10 = vsyncpa [#allocation3], 0 }
   0x6   :  { %12 = vsyncpa [#allocation3 + $0x1], 0 }
   0x7   :  { %13 = vsyncpa [#allocation4], 0 }
   0x8   :  { %15 = vsyncpa [#allocation4 + $0x1], 0  ;;  %s880_s12 = smov 0   ;;  %s882_s13 = smov 0  }
   0x9   :  { %s884_s14 = smov 0   ;;  %s886_s15 = smov 0  }
   0xa   :  { %s888_s16 = smov 0   ;;  %s890_s17 = smov 0  }
   0xb   :  { %s892_s18 = smov 0   ;;  %s894_s19 = smov 0  }
   0xc LB: > { %1212 = sst [smem:[#allocation14_spill]] %s821_s12  ;;  %s556_s20 = sadd.s32 4294967295, %s849_s19   ;;  %s849_s19 = sphi %s894_s19, %s21_s19   ;;  %s845_s18 = sphi %s892_s18, %s1237_s18   ;;  %s841_s17 = sphi %s890_s17, %s1232_s17   ;;  %s837_s16 = sphi %s888_s16, %s1236_s16   ;;  %s833_s15 = sphi %s886_s15, %s1231_s15   ;;  %s829_s14 = sphi %s884_s14, %s1235_s14   ;;  %s825_s13 = sphi %s882_s13, %s1234_s13   ;;  %s821_s12 = sphi %s880_s12, %s1233_s12  }
   0xd   : > { %1213 = sst [smem:[#allocation15_spill]] %s841_s17  ;;  %s557_s21 = sadd.s32 4294967294, %s849_s19  }
   0xe   : > { %1214 = sst [smem:[#allocation16_spill]] %s849_s19  ;;  %p91_p0 = scmp.ne.s32.totalorder %s829_s14, %s825_s13 }
   0xf   : > { %p92_p1 = scmp.eq.s32.totalorder %s849_s19, 0  ;;  %p97_p2 = scmp.ne.s32.totalorder %s825_s13, %s821_s12 }
  0x10   : > { %p928_p3 = scmp.eq.s32.totalorder %s556_s20, 0  ;;  %p123_p4 = scmp.eq.s32.totalorder %s556_s20, 7 }
  0x11   : > { %p932_p5 = por %p92_p1, %p91_p0  ;;  %p129_p6 = scmp.eq.s32.totalorder %s557_s21, 7 }
  0x12   : > { %p938_p7 = por %p928_p3, %p97_p2  ;;  %p942_p8 = por %p123_p4, %p91_p0 }
  0x13   : > { %p946_p9 = por %p129_p6, %p97_p2  ;;  %p558_p10 = scmp.ge.s32.totalorder %s849_s19, 1 }
  0x14   : > { %p136_p11 = scmp.lt.s32.totalorder %s849_s19, 9  ;;  %s1221_s0 = sld [smem:[#allocation19_spill]] }
  0x15   : > { %s1219_s27 = scalar_select %p946_p9, 1, 0 }
  0x16   : > { %p955_p12 = pnand %p558_p10, %p136_p11  ;;  %p606_p13 = scmp.lt.s32.totalorder %s849_s19, 8 }
  0x17   : > { %1220 = sst [smem:[#allocation17_spill]] %s1219_s27  ;;  %s851_s9 = smov [#allocation2]  }
  0x18   : > { %p589_p0 = pneg %p955_p12  ;;  %s1223_s1 = sld [smem:[#allocation20_spill]] }
  0x19   : > { %p967_p1 = pnand %p606_p13, %p932_p5  ;;  %s852_s10 = smov [#allocation6]  }
  0x1a   : > { %s148_s30 = sshll.u32 %s1221_s0, 4  ;;  %p590_p2 = pnand %p589_p0, %p928_p3  ;;  %s149_s30 = int_to_ptr.vmem [resolvable:$true] %s148_s30 }
  0x1b   : > { %s30_s11 = sadd.s32 1, %s841_s17  ;;  %s33_s20 = sadd.s32 1, %s845_s18 }
  0x1c   : > { %592 = dma.vmem_to_smem (!%p590_p2), %s149_s30, 16, %s851_s9, [#allocation5]  }
  0x1d   : > { %p31_p4 = scmp.ge.s32.totalorder %s30_s11, 4  ;;  %s169_s21 = sand.u32 1, %s829_s14  }
  0x1e   : > { %s158_s7 = sshll.u32 %s1223_s1, 4  ;;  %s562_s28 = sshll.u32 %s169_s21, 4  ;;  %s159_s7 = int_to_ptr.vmem [resolvable:$true] %s158_s7 }
  0x1f   : > { %595 = dma.vmem_to_smem (!%p590_p2), %s159_s7, 16, %s852_s10, [#allocation7]  }
  0x20   : > { %s1239_s11 = smov (%p31_p4, %s30_s11), 0  ;;  %s1241_s20 = smov (!%p31_p4, %s33_s20), %s845_s18 }
  0x21   : > { %1225 = sst [smem:[#allocation18_spill]] %s1239_s11  ;;  %s80_s24 = ssub.s32 %s841_s17, %s1239_s11 }
  0x22   : > { %p35_p5 = scmp.ge.s32.totalorder %s1241_s20, 2  ;;  %s563_s29 = sshll.u32 %s841_s17, 1 }
  0x23   : > { %s564_s5 = sshll.u32 %s845_s18, 3  ;;  %s173_s6 = scalar_lea.vmem [#allocation8], %s562_s28 }
  0x24   : > { %s183_s30 = sshll.u32 %s173_s6, 4  ;;  %s1243_s20 = smov (%p35_p5, %s1241_s20), 0  ;;  %s184_s30 = int_to_ptr.vmem [resolvable:$true] %s183_s30 }
  0x25   : > { %s178_s7 = sadd.s32 %s564_s5, %s563_s29  ;;  %s79_s9 = ssub.s32 %s845_s18, %s1243_s20 }
  0x26   : > { %s565_s10 = sshll.u32 %s178_s7, 3  ;;  %s81_s22 = sor.u32 %s80_s24, %s79_s9 }
  0x27   : > { %s180_s11 = scalar_lea.hbm %s1202_s2, %s565_s10  ;;  %p82_p6 = scmp.eq.s32.totalorder %s81_s22, 0 }
  0x28   : > { %s181_s27 = sshll.u32 %s180_s11, 4  ;;  %s1226_s17 = sadd.s32 1, %s829_s14  ;;  %s182_s27 = int_to_ptr.hbm [resolvable:$true] %s181_s27 }
  0x29   : > { %s993_s12 = scalar_select %p82_p6, %s829_s14, %s1226_s17  }
  0x2a   : > { %s170_s28 = scalar_lea.sflag [#allocation3], %s169_s21  ;;  %s853_s6 = smov 128  }
  0x2b   : > { %s854_s19 = smov 8   ;;  %195 = sbr.rel (%p955_p12) target bundleno = 460 (0x1cc), region = 32 }
  0x2c   : > { %599 = dma.hbm_to_vmem [thread:$0]  (!%p967_p1), %s182_s27, 256, %s184_s30, %s170_s28, %s853_s6, %s853_s6, %s854_s19  }
  0x30   : > { %804 = dma.done.wait (%p928_p3), [#allocation5], 16  }
  0x31   : > { %806 = vsyncadd (%p928_p3), [#allocation5], 4294967280 }
  0x32   : > { %808 = dma.done.wait (%p928_p3), [#allocation7], 16  }
  0x33   : > { %810 = vsyncadd (%p928_p3), [#allocation7], 4294967280  ;;  %s1008_s0 = sand.u32 1, %s825_s13  }
  0x34   : > { %s569_s1 = sshll.u32 %s1008_s0, 4  ;;  %s208_s17 = scalar_lea.sflag [#allocation3], %s1008_s0 }
  0x35   : > { %s211_s19 = scalar_lea.vmem [#allocation8], %s569_s1 }
  0x36   : > { %812 = dma.done.wait (%p938_p7), %s208_s17, 256  }
  0x37   : > { %814 = vsyncadd (%p938_p7), %s208_s17, 4294967040 }
  0x38   : > { %217 = sfence }
  0x39   : > { %v1018_v0 = vld [vmem:[%s211_s19] sm:$0xff]  ;;  %v1020_v1 = vld [vmem:[%s211_s19 + $0x8] sm:$0xff]  ;;  %v257_v2 = vlaneseq  ;;  %s855_s22 = smov 16   ;;  %vm282_vm4 = vcmask 1047680   ;;  %s856_s23 = smov 113   ;;  %vm423_vm7 = vcmask 130048  }
  0x3a   : > { %328 = vrot.lane.b32.xlu1 %v1018_v0, %s855_s22  ;;  %v268_v3 = vrot.slane %v1018_v0, 7  ;;  %v269_v4 = vrot.slane %v1020_v1, 7  ;;  %v275_v5 = vrot.slane %v1018_v0, 1  ;;  %v276_v6 = vrot.slane %v1020_v1, 1  ;;  %s857_s25 = smov 127   ;;  %s1078_s27 = smul.u32 9, %s833_s15 }
  0x3b   : > { %v258_v7 = vshrl.u32 %v257_v2, 7  ;;  %v1087_v41 = vand.u32 127, %v257_v2 }
  0x3c   : > { %s240_s4 = sadd.s32 1, %s1078_s27  ;;  %s1082_s8 = sld [smem:[#allocation2 + %s1078_s27]] }
  0x3d   : > { %vm262_vm0 = vcmp.eq.s32.totalorder %v258_v7, 0  ;;  %vm270_vm1 = vcmp.lt.s32.totalorder %v258_v7, 1  ;;  %vm277_vm2 = vcmp.lt.s32.totalorder %v258_v7, 7  ;;  %v259_v8 = vadd.s32 8, %v258_v7  ;;  %s241_s11 = sld [smem:[#allocation2 + %s240_s4]]  ;;  %s242_s21 = sadd.s32 2, %s1078_s27 }
  0x3e   : > { %v272_v9 = vsel %vm270_vm1, %v269_v4, %v268_v3  ;;  %v1029_v10 = vsel %vm277_vm2, %v275_v5, %v276_v6  ;;  %v279_v12 = vsel %vm277_vm2, %v276_v6, %v275_v5  ;;  %v1041_v14 = vsel %vm270_vm1, %v268_v3, %v269_v4  ;;  %s244_s24 = sadd.s32 3, %s1078_s27  ;;  %s1089_s29 = sld [smem:[#allocation2 + %s242_s21]] }
  0x3f   : > { %v1031_v11 = vsel %vm262_vm0, 0.0, %v272_v9  ;;  %373 = vrot.lane.b32.xlu2 %v1029_v10, %s855_s22  ;;  %vm265_vm3 = vcmp.eq.s32.totalorder %v259_v8, 15  ;;  %vm266_vm5 = vcmp.eq.s32.totalorder %v1087_v41, 0  ;;  %s246_s5 = sadd.s32 4, %s1078_s27  ;;  %s1093_s30 = sld [smem:[#allocation2 + %s244_s24]]  ;;  %vm267_vm6 = vcmp.eq.s32.totalorder %v1087_v41, 15 }
  0x40   : > { %283 = vrot.lane.b32.xlu0 %v1031_v11, %s855_s22  ;;  %v1039_v13 = vsel %vm265_vm3, 0.0, %v279_v12  ;;  %s250_s7 = sadd.s32 6, %s1078_s27  ;;  %s1099_s9 = sld [smem:[#allocation2 + %s246_s5]] }
  0x41   : > { %s248_s10 = sadd.s32 5, %s1078_s27  ;;  %s252_s28 = sadd.s32 7, %s1078_s27 }
  0x42   : > { %331 = vrot.lane.b32.xlu1 %v1020_v1, %s855_s22  ;;  %v313_v44 = vstv %s1082_s8  ;;  %s1105_s6 = sld [smem:[#allocation2 + %s250_s7]]  ;;  %s573_s4 = sshll.u32 %s837_s16, 3 }
  0x43   : > { %v318_v45 = vstv %s241_s11  ;;  %s1107_s17 = sld [smem:[#allocation2 + %s248_s10]]  ;;  %s235_s24 = scalar_lea.vmem [#allocation9], %s569_s1 }
  0x44   : > { %v320_v49 = vmul.f32 %v318_v45, %v1041_v14  ;;  %v319_v51 = vmul.f32 %v318_v45, %v1031_v11  ;;  %v323_v53 = vstv %s1089_s29  ;;  %s1117_s19 = sld [smem:[#allocation2 + %s252_s28]]  ;;  %s441_s29 = sshll.u32 %s235_s24, 4  ;;  %s442_s29 = int_to_ptr.vmem [resolvable:$true] %s441_s29 }
  0x45   : > { %v358_v59 = vstv %s1093_s30  ;;  %s427_s30 = scalar_lea.sflag [#allocation4], %s1008_s0  ;;  %s763_s1 = scalar_lea.hbm %s1203_s3, 128 }
  0x46   : > { %v363_v3 = vstv %s1099_s9 }
  0x47   : > { %376 = vrot.lane.b32.xlu2 %v1039_v13, %s855_s22  ;;  %v364_v8 = vmul.f32 %v363_v3, %v1018_v0 }
  0x48   : > { %286 = vrot.lane.b32.xlu0 %v1041_v14, %s855_s22 }
  0x99   : > { %v374_v15 = vpop.permute.xlu2 %373 }
  0x9a   : > { %v375_v26 = vsel %vm282_vm4, %v374_v15, %v1029_v10 }
  0xa1   : > { %v377_v18 = vpop.permute.xlu2 %376 }
  0xa2   : > { %v378_v21 = vsel %vm282_vm4, %v377_v18, %v1039_v13 }
  0xac   : > { %v329_v16 = vpop.permute.xlu1 %328 }
  0xad   : > { %v330_v17 = vsel %vm282_vm4, %v329_v16, %v1018_v0 }
  0xae   : > { %334 = vrot.lane.b32.xlu2 %v330_v17, %s855_s22  ;;  %v368_v17 = vstv %s1107_s17 }
  0xb2   : > { %v284_v19 = vpop.permute.xlu0 %283 }
  0xb3   : > { %v285_v20 = vsel %vm282_vm4, %v284_v19, %v1031_v11  ;;  %v408_v19 = vstv %s1117_s19 }
  0xb4   : > { %289 = vrot.lane.b32.xlu0 %v285_v20, %s855_s22  ;;  %v332_v22 = vpop.permute.xlu1 %331 }
  0xb5   : > { %v333_v23 = vsel %vm282_vm4, %v332_v22, %v1020_v1 }
  0xb6   : > { %381 = vrot.lane.b32.xlu2 %v378_v21, %s855_s22  ;;  %v365_v21 = vmul.f32 %v363_v3, %v1020_v1 }
  0xba   : > { %v287_v24 = vpop.permute.xlu0 %286 }
  0xbb   : > { %v288_v25 = vsel %vm282_vm4, %v287_v24, %v1041_v14 }
  0xbc   : > { %336 = vrot.lane.b32.xlu0 %v333_v23, %s855_s22  ;;  %291 = vrot.lane.b32.xlu1 %v288_v25, %s855_s22 }
  0xc4   : > { %379 = vrot.lane.b32.xlu1 %v375_v26, %s855_s22  ;;  %s254_s22 = sadd.s32 8, %s1078_s27  ;;  %s572_s27 = sshll.u32 %s833_s15, 1 }
  0xc5   : > { %s438_s8 = sadd.s32 %s573_s4, %s572_s27 }
 0x108   : > { %v335_v27 = vpop.permute.xlu2 %334 }
 0x109   : > { %v338_v28 = vsel %vm282_vm4, %v335_v27, %v1018_v0 }
 0x10a   : > { %342 = vrot.lane.b32.xlu1 %v338_v28, %s856_s23 }
 0x110   : > { %v382_v37 = vpop.permute.xlu2 %381 }
 0x111   : > { %v384_v38 = vsel %vm282_vm4, %v382_v37, %v1039_v13 }
 0x126   : > { %v290_v29 = vpop.permute.xlu0 %289 }
 0x127   : > { %v293_v34 = vsel %vm282_vm4, %v290_v29, %v1031_v11  ;;  %v403_v11 = vstv %s1105_s6 }
 0x12e   : > { %v292_v30 = vpop.permute.xlu1 %291  ;;  %v337_v31 = vpop.permute.xlu0 %336 }
 0x12f   : > { %v294_v32 = vsel %vm282_vm4, %v292_v30, %v1041_v14  ;;  %v339_v33 = vsel %vm282_vm4, %v337_v31, %v1020_v1 }
 0x130   : > { %307 = vrot.lane.b32.xlu0 %v294_v32, %s857_s25  ;;  %299 = vrot.lane.b32.xlu1 %v294_v32, %s856_s23 }
 0x131   : > { %344 = vrot.lane.b32.xlu2 %v339_v33, %s856_s23 }
 0x136   : > { %v380_v35 = vpop.permute.xlu1 %379 }
 0x137   : > { %v383_v36 = vsel %vm282_vm4, %v380_v35, %v1029_v10 }
 0x138   : > { %297 = vrot.lane.b32.xlu0 %v293_v34, %s856_s23  ;;  %352 = vrot.lane.b32.xlu1 %v339_v33, %s857_s25 }
 0x139   : > { %305 = vrot.lane.b32.xlu2 %v293_v34, %s857_s25 }
 0x140   : > { %350 = vrot.lane.b32.xlu0 %v338_v28, %s857_s25  ;;  %395 = vrot.lane.b32.xlu1 %v383_v36, %s857_s25  ;;  %v409_v28 = vmul.f32 %v408_v19, %v1029_v10  ;;  %v410_v10 = vmul.f32 %v408_v19, %v1039_v13 }
 0x141   : > { %387 = vrot.lane.b32.xlu2 %v383_v36, %s856_s23 }
 0x148   : > { %389 = vrot.lane.b32.xlu0 %v384_v38, %s856_s23  ;;  %s1125_s23 = sld [smem:[#allocation2 + %s254_s22]] }
 0x149   : > { %397 = vrot.lane.b32.xlu2 %v384_v38, %s857_s25  ;;  %s1136_s25 = sld [smem:[#allocation6 + %s833_s15]]  ;;  %s574_s15 = sshll.u32 %s438_s8, 3 }
 0x14a   : > { %s440_s21 = scalar_lea.hbm %s1203_s3, %s574_s15 }
 0x14b   : > { %s443_s5 = sshll.u32 %s440_s21, 4  ;;  %s444_s5 = int_to_ptr.hbm [resolvable:$true] %s443_s5 }
 0x14c   : > { %s757_s7 = sshra.s32 %s444_s5, 4  ;;  %s758_s7 = int_to_ptr.hbm [resolvable:$true] %s757_s7 }
 0x14d   : > { %s759_s9 = scalar_lea.hbm %s758_s7, 16  ;;  %p764_p11 = scmp.lt.s32.totalorder %s758_s7, %s1203_s3 }
 0x14e   : > { %v413_v29 = vstv %s1125_s23  ;;  %p760_p3 = scmp.ne.s32.totalorder %s758_s7, %s759_s9  ;;  %p765_p12 = scmp.lt.s32.totalorder %s763_s1, %s759_s9 }
 0x14f   : > { %v418_v37 = vstv %s1136_s25 }
 0x150   : > { %p761_p7 = pnand %p760_p3, %p942_p8  ;;  %p766_p13 = por %p765_p12, %p764_p11 }
 0x152   : > { %p762_p10 = pneg %p761_p7 }
 0x154   : > { %p767_p0 = pnand %p766_p13, %p762_p10 }
 0x17c   : > { %v343_v39 = vpop.permute.xlu1 %342 }
 0x17d   : > { %v348_v60 = vsel %vm266_vm5, 0.0, %v343_v39 }
 0x17e   : > { %v359_v4 = vmul.f32 %v358_v59, %v348_v60 }
 0x18b   : > { %v345_v40 = vpop.permute.xlu2 %344 }
 0x18c   : > { %v349_v2 = vsel %vm266_vm5, 0.0, %v345_v40 }
 0x18d   : > { %v360_v9 = vmul.f32 %v358_v59, %v349_v2 }
 0x193   : > { %v306_v47 = vpop.permute.xlu2 %305 }
 0x194   : > { %v311_v54 = vsel %vm267_vm6, 0.0, %v306_v47 }
 0x195   : > { %v324_v61 = vmul.f32 %v323_v53, %v311_v54 }
 0x19b   : > { %v388_v5 = vpop.permute.xlu2 %387 }
 0x19c   : > { %v393_v16 = vsel %vm266_vm5, 0.0, %v388_v5 }
 0x19d   : > { %v404_v26 = vmul.f32 %v403_v11, %v393_v16 }
 0x1a2   : > { %v300_v42 = vpop.permute.xlu1 %299  ;;  %v308_v43 = vpop.permute.xlu0 %307 }
 0x1a3   : > { %v304_v46 = vsel %vm266_vm5, 0.0, %v300_v42  ;;  %v312_v55 = vsel %vm267_vm6, 0.0, %v308_v43  ;;  %v398_v34 = vpop.permute.xlu2 %397 }
 0x1a4   : > { %v315_v48 = vmul.f32 %v313_v44, %v304_v46  ;;  %v325_v62 = vmul.f32 %v323_v53, %v312_v55  ;;  %v402_v43 = vsel %vm267_vm6, 0.0, %v398_v34 }
 0x1a5   : > { %v415_v46 = vmul.f32 %v413_v29, %v402_v43 }
 0x1a6   : > { %v322_v57 = vadd.f32 %v320_v49, %v315_v48 }
 0x1a8   : > { %v327_v6 = vadd.f32 %v325_v62, %v322_v57 }
 0x1aa   : > { %v353_v50 = vpop.permute.xlu1 %352  ;;  %v298_v52 = vpop.permute.xlu0 %297  ;;  %v362_v20 = vadd.f32 %v360_v9, %v327_v6 }
 0x1ab   : > { %v303_v56 = vsel %vm266_vm5, 0.0, %v298_v52  ;;  %v357_v24 = vsel %vm267_vm6, 0.0, %v353_v50 }
 0x1ac   : > { %v314_v58 = vmul.f32 %v313_v44, %v303_v56  ;;  %v367_v30 = vadd.f32 %v365_v21, %v362_v20  ;;  %v370_v31 = vmul.f32 %v368_v17, %v357_v24 }
 0x1ae   : > { %v321_v63 = vadd.f32 %v319_v51, %v314_v58  ;;  %v372_v39 = vadd.f32 %v370_v31, %v367_v30 }
 0x1b0   : > { %v326_v7 = vadd.f32 %v324_v61, %v321_v63 }
 0x1b2   : > { %v361_v12 = vadd.f32 %v359_v4, %v326_v7  ;;  %v351_v14 = vpop.permute.xlu0 %350  ;;  %v396_v15 = vpop.permute.xlu1 %395 }
 0x1b3   : > { %v356_v18 = vsel %vm267_vm6, 0.0, %v351_v14  ;;  %v401_v25 = vsel %vm267_vm6, 0.0, %v396_v15 }
 0x1b4   : > { %v366_v22 = vadd.f32 %v364_v8, %v361_v12  ;;  %v369_v23 = vmul.f32 %v368_v17, %v356_v18  ;;  %v414_v33 = vmul.f32 %v413_v29, %v401_v25 }
 0x1b6   : > { %v371_v27 = vadd.f32 %v369_v23, %v366_v22 }
 0x1b8   : > { %v406_v32 = vadd.f32 %v404_v26, %v371_v27 }
 0x1ba   : > { %v411_v35 = vadd.f32 %v409_v28, %v406_v32  ;;  %v390_v36 = vpop.permute.xlu0 %389 }
 0x1bb   : > { %v394_v38 = vsel %vm266_vm5, 0.0, %v390_v36 }
 0x1bc   : > { %v416_v40 = vadd.f32 %v414_v33, %v411_v35  ;;  %v405_v42 = vmul.f32 %v403_v11, %v394_v38 }
 0x1be   : > { %v419_v44 = vadd.f32 %v418_v37, %v416_v40  ;;  %v407_v45 = vadd.f32 %v405_v42, %v372_v39 }
 0x1c0   : > { %v421_v47 = vmax.f32 %v1018_v0, %v419_v44  ;;  %v412_v48 = vadd.f32 %v410_v10, %v407_v45 }
 0x1c2   : > { %v417_v49 = vadd.f32 %v415_v46, %v412_v48  ;;  %424 = vst.msk [vmem:[%s235_s24] sm:$0xff] %vm423_vm7, %v421_v47 }
 0x1c4   : > { %v420_v13 = vadd.f32 %v418_v37, %v417_v49 }
 0x1c6   : > { %v422_v41 = vmax.f32 %v1020_v1, %v420_v13 }
 0x1c8   : > { %425 = vst.msk [vmem:[%s235_s24 + $0x8] sm:$0xff] %vm423_vm7, %v422_v41 }
 0x1c9   : > { %770 = shalt.err (!%p767_p0)
}
 0x1ca   : > { %s858_s0 = smov 128   ;;  %s859_s19 = smov 8  }
 0x1cb   : > { %587 = dma.vmem_to_hbm [thread:$0]  (%p942_p8), %s442_s29, 256, %s444_s5, %s427_s30, %s858_s0, %s858_s0, %s859_s19  }
 0x1cc PF: > { %s1227_s22 = sld [smem:[#allocation16_spill]] }
 0x1cd   : > { %s1228_s23 = sld [smem:[#allocation14_spill]] }
 0x1d2   : > { %p609_p1 = scmp.ge.s32.totalorder %s1227_s22, 2 }
 0x1d3   : > { %s458_s27 = sand.u32 1, %s1228_s23  }
 0x1d4   : > { %p601_p2 = pnand %p609_p1, %p946_p9  ;;  %s459_s4 = scalar_lea.sflag [#allocation4], %s458_s27 }
 0x1d6   : > { %p602_p4 = pneg %p601_p2 }
 0x1d8   : > { %816 = dma.done.wait (%p602_p4), %s459_s4, 256  }
 0x1d9   : > { %818 = vsyncadd (%p602_p4), %s459_s4, 4294967040  ;;  %s21_s19 = sadd.s32 1, %s1227_s22   ;;  %s1230_s8 = smov %s993_s12 }
 0x1da   : > { %p18_p5 = scmp.ge.s32.totalorder %s21_s19, 10   ;;  %s1231_s15 = sld [smem:[#allocation15_spill]] }
 0x1db   : > { %s1232_s17 = sld [smem:[#allocation18_spill]]  ;;  %s1233_s12 = smov %s825_s13 }
 0x1dc   : > { %s1234_s13 = smov %s829_s14  ;;  %s1235_s14 = smov %s1230_s8 }
 0x1dd   : > { %s1236_s16 = smov %s845_s18  ;;  %s1237_s18 = smov %s1243_s20 }
 0x1de   :  { %20 = sbr.rel (!%p18_p5) target bundleno = 12 (0xc), region = 86 }
 0x1e3   :  { %465 = vsyncpa [#allocation3], 1 }
 0x1e4   :  { %467 = vsyncpa [#allocation3 + $0x1], 1 }
 0x1e5   :  { %468 = vsyncpa [#allocation4], 1 }
 0x1e6   :  { %470 = vsyncpa [#allocation4 + $0x1], 1 }
 0x1e7   :  { %471 = vsyncpa [#allocation5], 1 }
 0x1e8   :  { %473 = vsyncpa [#allocation5 + $0x1], 1 }
 0x1e9   :  { %474 = vsyncpa [#allocation7], 1 }

</bundles_post_ra>
